<compile_context>
chip_gen: v7x
topology: tpu7x:2x2x1
jax: 0.10.0
libtpu: 0.0.40
codegen_flags: <defaults>
</compile_context>

<pallas_src>
import jax
import jax.numpy as jnp
from jax.experimental import pallas as pl
from jax.experimental.pallas import tpu as pltpu

_SQRT_2_OVER_PI = 0.7978845608
_COEF = 0.044715


def _gelu_kernel(x_ref, o_ref):
    # fp32_gelu_op=True: always compute in float32, cast back to the I/O dtype.
    x = x_ref[...].astype(jnp.float32)
    y = 0.5 * x * (1.0 + jnp.tanh(x * _SQRT_2_OVER_PI * (1.0 + _COEF * x * x)))
    o_ref[...] = y.astype(o_ref.dtype)


def _choose_2d_view(shape):
    """Pick a lane-dense (rows, cols) view of the flattened tensor.

    Prefers cols that is a multiple of 128 (unmasked full-lane stores); falls
    back to (prod(leading), last_dim) when the element count is not 128-aligned
    (a full-extent last block dim is always a legal BlockSpec).
    """
    n = 1
    for d in shape:
        n *= d
    for cols in (1024, 512, 256, 128):
        if n % cols == 0:
            return n // cols, cols
    hidden = shape[-1] if len(shape) >= 1 else 1
    return n // hidden, hidden


def gelu_pallas(x, *, target_block_bytes=2 * 1024 * 1024):
    """FastGelu (tanh approximation), formula=4, fp32_gelu_op=True.

    Returns a tuple (out,) like the reference nn.Module.forward.
    """
    orig_shape = x.shape
    rows, cols = _choose_2d_view(orig_shape)
    x2 = x.reshape(rows, cols)  # contiguous reshape: metadata only, no HBM pass

    itemsize = jnp.dtype(x.dtype).itemsize
    # Per-buffer block sized by VMEM budget; sublane dim a multiple of 8 (or
    # the full extent), so ragged grids stay legal.
    block_rows = max(8, (target_block_bytes // (cols * itemsize)) // 8 * 8)
    if block_rows >= rows:
        block_rows = rows  # full extent -> always a legal block dim
    grid = (pl.cdiv(rows, block_rows),)  # ragged last block handled by Pallas

    out2 = pl.pallas_call(
        _gelu_kernel,
        out_shape=jax.ShapeDtypeStruct((rows, cols), x.dtype),
        grid=grid,
        in_specs=[pl.BlockSpec((block_rows, cols), lambda i: (i, 0))],
        out_specs=pl.BlockSpec((block_rows, cols), lambda i: (i, 0)),
        compiler_params=pltpu.CompilerParams(
            dimension_semantics=("parallel",),
            # 2 in-buffers + 2 out-buffers at ~2 MiB each (~8 MiB) -> plenty of
            # headroom on v5e/v6e/v7x; raise the scoped cap explicitly.
            vmem_limit_bytes=32 * 1024 * 1024,
        ),
    )(x2)

    return (out2.reshape(orig_shape),)


def gelu_reference(x):
    xf = x.astype(jnp.float32)
    y = 0.5 * xf * (1.0 + jnp.tanh(xf * _SQRT_2_OVER_PI * (1.0 + _COEF * xf * xf)))
    return y.astype(x.dtype)


if __name__ == "__main__":
    key = jax.random.PRNGKey(0)
    batch, seq, hidden = 2, 8, 32
    x_f32 = jax.random.normal(key, (batch, seq, hidden), dtype=jnp.float32)
    x_f16 = x_f32.astype(jnp.float16)

    (out_f32,) = gelu_pallas(x_f32)
    (out_f16,) = gelu_pallas(x_f16)

    assert out_f32.shape == x_f32.shape and out_f32.dtype == jnp.float32
    assert out_f16.shape == x_f16.shape and out_f16.dtype == jnp.float16
    assert jnp.allclose(out_f32, gelu_reference(x_f32), atol=1e-5, rtol=1e-5)
    assert jnp.allclose(
        out_f16.astype(jnp.float32),
        gelu_reference(x_f16).astype(jnp.float32),
        atol=1e-2, rtol=1e-2,
    )

    # Fallback path: element count not a multiple of 128 (full-extent lane dim).
    x_odd = jax.random.normal(jax.random.PRNGKey(1), (3, 5, 24), dtype=jnp.float32)
    (out_odd,) = gelu_pallas(x_odd)
    assert jnp.allclose(out_odd, gelu_reference(x_odd), atol=1e-5, rtol=1e-5)

    # Ragged-grid path: multiple grid steps with a masked partial last block.
    x_rag = jax.random.normal(jax.random.PRNGKey(2), (4, 33, 128), dtype=jnp.float32)
    (out_rag,) = gelu_pallas(x_rag, target_block_bytes=8 * 512 * 4)
    assert jnp.allclose(out_rag, gelu_reference(x_rag), atol=1e-5, rtol=1e-5)

    jax.block_until_ready((out_f32, out_f16, out_odd, out_rag))
    print("KERNEL_OK")
</pallas_src>

<mosaic_0001>
module attributes {stable_mosaic.version = 11 : i64} {
  func.func @_gelu_kernel(%arg0: i32, %arg1: memref<1x512xf32, #tpu.memory_space<vmem>>, %arg2: memref<1x512xf32, #tpu.memory_space<vmem>>) attributes {dimension_semantics = [#tpu.dimension_semantics<parallel>], iteration_bounds = array<i64: 1>, scalar_prefetch = 0 : i64, scratch_operands = 0 : i64, tpu.core_type = #tpu.core_type<tc>, window_params = [{transform_indices = @transform_0, window_bounds = array<i64: 1, 512>}, {transform_indices = @transform_1, window_bounds = array<i64: 1, 512>}]} {
    %c0 = arith.constant 0 : index
    %c0_0 = arith.constant 0 : index
    %0 = vector.load %arg1[%c0, %c0_0] : memref<1x512xf32, #tpu.memory_space<vmem>>, vector<1x512xf32>
    %cst = arith.constant 5.000000e-01 : f32
    %1 = vector.broadcast %cst : f32 to vector<1x512xf32>
    %2 = arith.mulf %1, %0 : vector<1x512xf32>
    %cst_1 = arith.constant 0.797884583 : f32
    %3 = vector.broadcast %cst_1 : f32 to vector<1x512xf32>
    %4 = arith.mulf %0, %3 : vector<1x512xf32>
    %cst_2 = arith.constant 4.471500e-02 : f32
    %5 = vector.broadcast %cst_2 : f32 to vector<1x512xf32>
    %6 = arith.mulf %5, %0 : vector<1x512xf32>
    %7 = arith.mulf %6, %0 : vector<1x512xf32>
    %cst_3 = arith.constant 1.000000e+00 : f32
    %8 = vector.broadcast %cst_3 : f32 to vector<1x512xf32>
    %9 = arith.addf %8, %7 : vector<1x512xf32>
    %10 = arith.mulf %4, %9 : vector<1x512xf32>
    %11 = math.tanh %10 : vector<1x512xf32>
    %cst_4 = arith.constant 1.000000e+00 : f32
    %12 = vector.broadcast %cst_4 : f32 to vector<1x512xf32>
    %13 = arith.addf %12, %11 : vector<1x512xf32>
    %14 = arith.mulf %2, %13 : vector<1x512xf32>
    %c0_5 = arith.constant 0 : index
    %c0_6 = arith.constant 0 : index
    %15 = vector.load %arg2[%c0_5, %c0_6] : memref<1x512xf32, #tpu.memory_space<vmem>>, vector<1x512xf32>
    tpu.vector_store %arg2[%c0_5, %c0_6], %14 {strides = array<i32>} : memref<1x512xf32, #tpu.memory_space<vmem>>, vector<1x512xf32>,
    return
  }
  func.func @transform_0(%arg0: i32) -> (i32, i32) {
    %c0_i32 = arith.constant 0 : i32
    %c0_i32_0 = arith.constant 0 : i32
    return %arg0, %c0_i32 : i32, i32
  }
  func.func @transform_1(%arg0: i32) -> (i32, i32) {
    %c0_i32 = arith.constant 0 : i32
    %c0_i32_0 = arith.constant 0 : i32
    return %arg0, %c0_i32 : i32, i32
  }
}

</mosaic_0001>

<bundles_post_ra>
// kernel: tpu_custom_call.1
= control target key start
LH: loop header
LB: loop body
LE: loop exit
PB: predicated region body
PF: predicated region fallthrough
CT: control target
= control target key end

     0   :  { %6 = vsyncpa [#allocation3], 0  ;;  %s139_s0 = inlined_call_operand.hbm [shape: f32[1,512], index: 0, kind: input, shape index: {}]   ;;  %s140_s1 = inlined_call_operand.hbm [shape: f32[1,512], index: 1, kind: output, shape index: {}]  }
   0x1   :  { %7 = vsyncpa [#allocation4], 0  ;;  %s103_s6 = smov [#allocation2]   ;;  %s55_s10 = scalar_lea.hbm %s139_s0, 64 }
   0x2   :  { %s14_s7 = sshll.u32 %s103_s6, 4  ;;  %p56_p0 = scmp.ne.s32.totalorder %s139_s0, %s55_s10  ;;  %s15_s7 = int_to_ptr.vmem [resolvable:$true] %s14_s7 }
   0x3   :  { %p59_p1 = scmp.lt.u32.totalorder %s55_s10, %s139_s0 }
   0x5   :  { %p61_p2 = pnand %p59_p1, %p56_p0 }
   0x7   :  { %64 = shalt.err (!%p61_p2)
}
   0x8   :  { %s65_s15 = scalar_lea.vmem %s15_s7, 64  ;;  %p70_p4 = scmp.lt.s32.totalorder %s15_s7, %s15_s7 }
   0x9   :  { %p66_p3 = scmp.ne.s32.totalorder %s15_s7, %s65_s15  ;;  %p71_p5 = scmp.lt.s32.totalorder %s65_s15, %s65_s15 }
   0xb   :  { %p72_p6 = por %p71_p5, %p70_p4 }
   0xd   :  { %p73_p7 = pnand %p72_p6, %p66_p3 }
   0xf   :  { %76 = shalt.err (!%p73_p7)
}
  0x10   :  { %17 = dma.hbm_to_vmem [thread:$0]  %s139_s0, 64, %s15_s7, [#allocation3]  }
  0x11   :  { %99 = dma.done.wait [#allocation3], 64  }
  0x12   :  { %100 = vsyncadd [#allocation3], 4294967232  ;;  %v21_v0 = vld [vmem:[#allocation2] sm:$0xf]  ;;  %v31_v6 = vlaneseq  ;;  %s104_s18 = smov [#allocation5]  }
  0x13   :  { %v24_v1 = vmul.f32 0.044715, %v21_v0  ;;  %v23_v2 = vmul.f32 0.7978846, %v21_v0  ;;  %v22_v7 = vmul.f32 0.5, %v21_v0  ;;  %s42_s19 = sshll.u32 %s104_s18, 4  ;;  %s43_s19 = int_to_ptr.vmem [resolvable:$true] %s42_s19 }
  0x14   :  { %vm33_vm0 = vcmp.lt.s32.totalorder %v31_v6, 512  ;;  %s77_s0 = scalar_lea.vmem %s43_s19, 64  ;;  %p82_p9 = scmp.lt.s32.totalorder %s43_s19, %s43_s19 }
  0x15   :  { %v25_v3 = vmul.f32 %v24_v1, %v21_v0  ;;  %p78_p8 = scmp.ne.s32.totalorder %s43_s19, %s77_s0  ;;  %p83_p10 = scmp.lt.s32.totalorder %s77_s0, %s77_s0 }
  0x17   :  { %v26_v4 = vadd.f32 1.0, %v25_v3  ;;  %p84_p11 = por %p83_p10, %p82_p9 }
  0x19   :  { %v27_v5 = vmul.f32 %v26_v4, %v23_v2  ;;  %p85_p12 = pnand %p84_p11, %p78_p8 }
  0x1b   :  { %53 = vtanh.f32 %v27_v5 }
  0x25   :  { %v54_v8 = vpop.eup %53 }
  0x26   :  { %v29_v9 = vadd.f32 1.0, %v54_v8 }
  0x28   :  { %v30_v10 = vmul.f32 %v29_v9, %v22_v7 }
  0x2a   :  { %35 = vst.msk [vmem:[#allocation5] sm:$0xf] %vm33_vm0, %v30_v10 }
  0x2b   :  { %88 = shalt.err (!%p85_p12)
}
  0x2c   :  { %s89_s22 = scalar_lea.hbm %s140_s1, 64 }
  0x2d   :  { %p90_p13 = scmp.ne.s32.totalorder %s140_s1, %s89_s22  ;;  %p93_p0 = scmp.lt.u32.totalorder %s89_s22, %s140_s1 }
  0x2f   :  { %p95_p1 = pnand %p93_p0, %p90_p13 }
  0x31   :  { %98 = shalt.err (!%p95_p1)
}
  0x32   :  { %45 = dma.vmem_to_hbm [thread:$0]  %s43_s19, 64, %s140_s1, [#allocation4]  }
  0x33   :  { %101 = dma.done.wait [#allocation4], 64  }
  0x34   :  { %102 = vsyncadd [#allocation4], 4294967232 }
  0x35   :  { %49 = vsyncpa [#allocation3], 1 }
  0x36   :  { %50 = vsyncpa [#allocation4], 1 }

</bundles_post_ra>
